<compile_context>
chip_gen: v5e
topology: v5e:2x2
jax: 0.10.0
libtpu: 0.0.40
codegen_flags: <defaults>
</compile_context>

<pallas_src>
import jax
import jax.numpy as jnp
from jax import lax
from jax.experimental import pallas as pl
from jax.experimental.pallas import tpu as pltpu

LANES = 128
SUB = 8  # f32 sublanes per vreg


def _partial_sums_f32(x, y):
    """Plain-jnp partial sums [sum d^2, sum |d|, sum (x^3-y^3)^2] (small tails only)."""
    x = x.astype(jnp.float32)
    y = y.astype(jnp.float32)
    d = x - y
    d3 = x * x * x - y * y * y
    return jnp.stack([jnp.sum(d * d), jnp.sum(jnp.abs(d)), jnp.sum(d3 * d3)])


def _fold_to_sublanes(v, rows):
    """Sum a (rows, LANES) f32 value down to (SUB, LANES) via vreg-aligned adds."""
    acc = v[0:SUB, :]
    for g in range(1, rows // SUB):
        acc = acc + v[g * SUB:(g + 1) * SUB, :]
    return acc


def _make_kernel(tile_rows, chunk_rows, unroll):
    n_chunks = tile_rows // chunk_rows
    align_hint = chunk_rows & (-chunk_rows)  # largest power-of-two divisor

    def kernel(x_ref, y_ref, acc_ref):
        t = pl.program_id(0)

        @pl.when(t == 0)
        def _init():
            acc_ref[...] = jnp.zeros_like(acc_ref)

        def body(c, carry):
            a_sq, a_ab, a_cb = carry
            r = pl.multiple_of(c * chunk_rows, align_hint)
            xc = x_ref[pl.ds(r, chunk_rows), :].astype(jnp.float32)
            yc = y_ref[pl.ds(r, chunk_rows), :].astype(jnp.float32)
            d = xc - yc
            d3 = xc * xc * xc - yc * yc * yc
            sq = _fold_to_sublanes(d * d, chunk_rows)
            ab = _fold_to_sublanes(jnp.abs(d), chunk_rows)
            cb = _fold_to_sublanes(d3 * d3, chunk_rows)
            return a_sq + sq, a_ab + ab, a_cb + cb

        zero = jnp.zeros((SUB, LANES), jnp.float32)
        s_sq, s_ab, s_cb = lax.fori_loop(
            0, n_chunks, body, (zero, zero, zero), unroll=unroll)

        # One 3-vreg read-modify-write per grid step (not per chunk).
        acc_ref[0] += s_sq
        acc_ref[1] += s_ab
        acc_ref[2] += s_cb

    return kernel


def l3_mse_2(x, y, *, max_tile_rows=2048):
    """Compute L3_MSE_2(x, y) with a Pallas TPU streaming-reduction kernel."""
    assert x.shape == y.shape, (x.shape, y.shape)
    total = int(x.size)

    xf = x.reshape(-1)
    yf = y.reshape(-1)

    itemsize = int(jnp.dtype(x.dtype).itemsize)
    # Sub-32-bit dtypes pack along sublanes: 8 (f32) / 16 (bf16) / 32 (int8/fp8).
    row_align = SUB * max(1, 4 // max(itemsize, 1))

    rows = total // LANES          # full 128-lane rows
    main = rows * LANES

    kernel_rows = 0
    if rows >= row_align:
        # Rows consumed per inner-loop iteration (dtype-packing aligned).
        chunk_rows = max(row_align, min(32, (rows // row_align) * row_align))
        tile_cap = max(chunk_rows, (max_tile_rows // chunk_rows) * chunk_rows)
        tile_rows = min(tile_cap, (rows // chunk_rows) * chunk_rows)
        steps = rows // tile_rows
        kernel_rows = steps * tile_rows

    sums = jnp.zeros((3,), jnp.float32)
    tail_start = 0

    if kernel_rows > 0:
        # Lane-dense slab; zero-copy reshape whenever total % 128 == 0
        # (no jnp.pad / no full-array copy before the kernel streams 2N).
        x2d = (xf if main == total else xf[:main]).reshape(rows, LANES)
        y2d = (yf if main == total else yf[:main]).reshape(rows, LANES)

        n_chunks = tile_rows // chunk_rows
        unroll = max(1, min(8, n_chunks))

        compiler_kwargs = dict(dimension_semantics=("arbitrary",))
        in_block_bytes = tile_rows * LANES * itemsize
        # Two inputs, double-buffered; only raise scoped VMEM if a caller
        # pushes max_tile_rows past the default limits (e.g. v5e's 16 MiB).
        if 4 * in_block_bytes > 12 * 1024 * 1024:
            compiler_kwargs["vmem_limit_bytes"] = 4 * in_block_bytes + (4 << 20)

        partials = pl.pallas_call(
            _make_kernel(tile_rows, chunk_rows, unroll),
            out_shape=jax.ShapeDtypeStruct((3, SUB, LANES), jnp.float32),
            grid=(steps,),
            in_specs=[
                pl.BlockSpec((tile_rows, LANES), lambda t: (t, 0)),
                pl.BlockSpec((tile_rows, LANES), lambda t: (t, 0)),
            ],
            # Constant index map -> resident VMEM accumulator, written back once.
            out_specs=pl.BlockSpec((3, SUB, LANES), lambda t: (0, 0, 0)),
            compiler_params=pltpu.CompilerParams(**compiler_kwargs),
        )(x2d, y2d)
        sums = sums + partials.reshape(3, -1).sum(axis=1)

        if kernel_rows < rows:
            # Row tail (< tile_rows rows): cheap plain-jnp pass.
            sums = sums + _partial_sums_f32(x2d[kernel_rows:], y2d[kernel_rows:])
        tail_start = main

    if tail_start < total:
        # Lane tail (< 128 elements) and/or tiny-input fallback.
        sums = sums + _partial_sums_f32(xf[tail_start:], yf[tail_start:])

    n = jnp.float32(total)
    mse = sums[0] / n
    mae = sums[1] / n
    l3 = (sums[2] / n) ** 0.25
    return l3 * (mse + mae)


def _reference(x, y):
    x = x.astype(jnp.float32)
    y = y.astype(jnp.float32)
    mse = jnp.mean((x - y) ** 2)
    mae = jnp.mean(jnp.abs(x - y))
    l3 = jnp.mean((x ** 3 - y ** 3) ** 2) ** 0.25
    return l3 * (mse + mae)


if __name__ == "__main__":
    key = jax.random.PRNGKey(0)
    kx, ky = jax.random.split(key)
    shape = (2, 4, 16, 16)  # 2048 elements = 16 rows x 128 lanes
    x = jax.random.normal(kx, shape, dtype=jnp.float32)
    y = jax.random.normal(ky, shape, dtype=jnp.float32)

    out = jax.block_until_ready(l3_mse_2(x, y))
    ref = jax.block_until_ready(_reference(x, y))

    assert jnp.allclose(out, ref, rtol=1e-5, atol=1e-5), (out, ref)
    print("KERNEL_OK")
</pallas_src>

<mosaic_0001>
module attributes {stable_mosaic.version = 11 : i64} {
  func.func @kernel(%arg0: i32, %arg1: memref<16x128xf32, #tpu.memory_space<vmem>>, %arg2: memref<16x128xf32, #tpu.memory_space<vmem>>, %arg3: memref<3x8x128xf32, #tpu.memory_space<vmem>>) attributes {dimension_semantics = [#tpu.dimension_semantics<arbitrary>], iteration_bounds = array<i64: 1>, scalar_prefetch = 0 : i64, scratch_operands = 0 : i64, tpu.core_type = #tpu.core_type<tc>, window_params = [{transform_indices = @transform_0, window_bounds = array<i64: 16, 128>}, {transform_indices = @transform_1, window_bounds = array<i64: 16, 128>}, {pipeline_mode = #tpu.pipeline_mode<synchronous>, transform_indices = @transform_2, window_bounds = array<i64: 3, 8, 128>}]} {
    %c0_i32 = arith.constant 0 : i32
    %0 = arith.cmpi eq, %arg0, %c0_i32 : i32
    %1 = arith.extui %0 : i1 to i32
    %c0_i32_0 = arith.constant 0 : i32
    %2 = arith.cmpi ne, %1, %c0_i32_0 : i32
    scf.if %2 {
      %cst_19 = arith.constant 0.000000e+00 : f32
      %49 = vector.broadcast %cst_19 : f32 to vector<3x8x128xf32>
      %c0_20 = arith.constant 0 : index
      %c0_21 = arith.constant 0 : index
      %c0_22 = arith.constant 0 : index
      %50 = vector.load %arg3[%c0_20, %c0_21, %c0_22] : memref<3x8x128xf32, #tpu.memory_space<vmem>>, vector<3x8x128xf32>
      tpu.vector_store %arg3[%c0_20, %c0_21, %c0_22], %49 {strides = array<i32>} : memref<3x8x128xf32, #tpu.memory_space<vmem>>, vector<3x8x128xf32>,
    } else {
    }
    %cst = arith.constant 0.000000e+00 : f32
    %3 = vector.broadcast %cst : f32 to vector<8x128xf32>
    %c0_i32_1 = arith.constant 0 : i32
    %c16_i32 = arith.constant 16 : i32
    %4 = arith.muli %c0_i32_1, %c16_i32 : i32
    %5 = tpu.assume_multiple %4, 16 : i32
    %6 = arith.index_cast %5 : i32 to index
    %c0 = arith.constant 0 : index
    %7 = vector.load %arg1[%6, %c0] : memref<16x128xf32, #tpu.memory_space<vmem>>, vector<16x128xf32>
    %8 = arith.index_cast %5 : i32 to index
    %c0_2 = arith.constant 0 : index
    %9 = vector.load %arg2[%8, %c0_2] : memref<16x128xf32, #tpu.memory_space<vmem>>, vector<16x128xf32>
    %10 = arith.subf %7, %9 : vector<16x128xf32>
    %11 = arith.mulf %7, %7 : vector<16x128xf32>
    %12 = arith.mulf %11, %7 : vector<16x128xf32>
    %13 = arith.mulf %9, %9 : vector<16x128xf32>
    %14 = arith.mulf %13, %9 : vector<16x128xf32>
    %15 = arith.subf %12, %14 : vector<16x128xf32>
    %16 = arith.mulf %10, %10 : vector<16x128xf32>
    %17 = vector.extract_strided_slice %16 {offsets = [0, 0], sizes = [8, 128], strides = [1, 1]} : vector<16x128xf32> to vector<8x128xf32>
    %18 = vector.extract_strided_slice %16 {offsets = [8, 0], sizes = [8, 128], strides = [1, 1]} : vector<16x128xf32> to vector<8x128xf32>
    %19 = arith.addf %17, %18 : vector<8x128xf32>
    %20 = math.absf %10 : vector<16x128xf32>
    %21 = vector.extract_strided_slice %20 {offsets = [0, 0], sizes = [8, 128], strides = [1, 1]} : vector<16x128xf32> to vector<8x128xf32>
    %22 = vector.extract_strided_slice %20 {offsets = [8, 0], sizes = [8, 128], strides = [1, 1]} : vector<16x128xf32> to vector<8x128xf32>
    %23 = arith.addf %21, %22 : vector<8x128xf32>
    %24 = arith.mulf %15, %15 : vector<16x128xf32>
    %25 = vector.extract_strided_slice %24 {offsets = [0, 0], sizes = [8, 128], strides = [1, 1]} : vector<16x128xf32> to vector<8x128xf32>
    %26 = vector.extract_strided_slice %24 {offsets = [8, 0], sizes = [8, 128], strides = [1, 1]} : vector<16x128xf32> to vector<8x128xf32>
    %27 = arith.addf %25, %26 : vector<8x128xf32>
    %28 = arith.addf %3, %19 : vector<8x128xf32>
    %29 = arith.addf %3, %23 : vector<8x128xf32>
    %30 = arith.addf %3, %27 : vector<8x128xf32>
    %c1_i32 = arith.constant 1 : i32
    %c0_3 = arith.constant 0 : index
    %c0_4 = arith.constant 0 : index
    %c0_5 = arith.constant 0 : index
    %31 = vector.load %arg3[%c0_3, %c0_4, %c0_5] : memref<3x8x128xf32, #tpu.memory_space<vmem>>, vector<1x8x128xf32>
    %32 = vector.shape_cast %31 : vector<1x8x128xf32> to vector<8x128xf32>
    %33 = arith.addf %32, %28 : vector<8x128xf32>
    %c0_6 = arith.constant 0 : index
    %c0_7 = arith.constant 0 : index
    %c0_8 = arith.constant 0 : index
    %34 = vector.load %arg3[%c0_6, %c0_7, %c0_8] : memref<3x8x128xf32, #tpu.memory_space<vmem>>, vector<1x8x128xf32>
    %35 = vector.shape_cast %34 : vector<1x8x128xf32> to vector<8x128xf32>
    %36 = vector.shape_cast %33 : vector<8x128xf32> to vector<1x8x128xf32>
    tpu.vector_store %arg3[%c0_6, %c0_7, %c0_8], %36 {strides = array<i32>} : memref<3x8x128xf32, #tpu.memory_space<vmem>>, vector<1x8x128xf32>,
    %c1 = arith.constant 1 : index
    %c0_9 = arith.constant 0 : index
    %c0_10 = arith.constant 0 : index
    %37 = vector.load %arg3[%c1, %c0_9, %c0_10] : memref<3x8x128xf32, #tpu.memory_space<vmem>>, vector<1x8x128xf32>
    %38 = vector.shape_cast %37 : vector<1x8x128xf32> to vector<8x128xf32>
    %39 = arith.addf %38, %29 : vector<8x128xf32>
    %c1_11 = arith.constant 1 : index
    %c0_12 = arith.constant 0 : index
    %c0_13 = arith.constant 0 : index
    %40 = vector.load %arg3[%c1_11, %c0_12, %c0_13] : memref<3x8x128xf32, #tpu.memory_space<vmem>>, vector<1x8x128xf32>
    %41 = vector.shape_cast %40 : vector<1x8x128xf32> to vector<8x128xf32>
    %42 = vector.shape_cast %39 : vector<8x128xf32> to vector<1x8x128xf32>
    tpu.vector_store %arg3[%c1_11, %c0_12, %c0_13], %42 {strides = array<i32>} : memref<3x8x128xf32, #tpu.memory_space<vmem>>, vector<1x8x128xf32>,
    %c2 = arith.constant 2 : index
    %c0_14 = arith.constant 0 : index
    %c0_15 = arith.constant 0 : index
    %43 = vector.load %arg3[%c2, %c0_14, %c0_15] : memref<3x8x128xf32, #tpu.memory_space<vmem>>, vector<1x8x128xf32>
    %44 = vector.shape_cast %43 : vector<1x8x128xf32> to vector<8x128xf32>
    %45 = arith.addf %44, %30 : vector<8x128xf32>
    %c2_16 = arith.constant 2 : index
    %c0_17 = arith.constant 0 : index
    %c0_18 = arith.constant 0 : index
    %46 = vector.load %arg3[%c2_16, %c0_17, %c0_18] : memref<3x8x128xf32, #tpu.memory_space<vmem>>, vector<1x8x128xf32>
    %47 = vector.shape_cast %46 : vector<1x8x128xf32> to vector<8x128xf32>
    %48 = vector.shape_cast %45 : vector<8x128xf32> to vector<1x8x128xf32>
    tpu.vector_store %arg3[%c2_16, %c0_17, %c0_18], %48 {strides = array<i32>} : memref<3x8x128xf32, #tpu.memory_space<vmem>>, vector<1x8x128xf32>,
    return
  }
  func.func @transform_0(%arg0: i32) -> (i32, i32) {
    %c0_i32 = arith.constant 0 : i32
    %c0_i32_0 = arith.constant 0 : i32
    return %arg0, %c0_i32 : i32, i32
  }
  func.func @transform_1(%arg0: i32) -> (i32, i32) {
    %c0_i32 = arith.constant 0 : i32
    %c0_i32_0 = arith.constant 0 : i32
    return %arg0, %c0_i32 : i32, i32
  }
  func.func @transform_2(%arg0: i32) -> (i32, i32, i32) {
    %c0_i32 = arith.constant 0 : i32
    %c0_i32_0 = arith.constant 0 : i32
    %c0_i32_1 = arith.constant 0 : i32
    %c0_i32_2 = arith.constant 0 : i32
    return %c0_i32, %c0_i32_0, %c0_i32_1 : i32, i32, i32
  }
}

</mosaic_0001>

<bundles_post_ra>
// kernel: tpu_custom_call.1
= control target key start
LH: loop header
LB: loop body
LE: loop exit
PB: predicated region body
PF: predicated region fallthrough
CT: control target
= control target key end

     0   :  { %7 = vsyncpa [#allocation3], 0  ;;  %s232_s0 = inlined_call_operand.hbm [shape: f32[16,128], index: 0, kind: input, shape index: {}]   ;;  %s233_s1 = inlined_call_operand.hbm [shape: f32[16,128], index: 1, kind: input, shape index: {}]   ;;  %s234_s2 = inlined_call_operand.hbm [shape: f32[3,8,128], index: 2, kind: output, shape index: {}]  }
   0x1   :  { %8 = vsyncpa [#allocation6], 0 }
   0x2   :  { %9 = vsyncpa [#allocation4], 0  ;;  %s14_s11 = sshll.u32 %s232_s0, 4  ;;  %s194_s12 = smov [#allocation2]   ;;  %s15_s11 = int_to_ptr.hbm [resolvable:$true] %s14_s11 }
   0x3   :  { %s16_s13 = sshll.u32 %s194_s12, 4  ;;  %s27_s16 = sshll.u32 %s233_s1, 4  ;;  %s17_s13 = int_to_ptr.vmem [resolvable:$true] %s16_s13  ;;  %s28_s16 = int_to_ptr.hbm [resolvable:$true] %s27_s16 }
   0x4   :  { %s195_s17 = smov 128   ;;  %s196_s18 = smov 8  }
   0x5   :  { %22 = dma.hbm_to_vmem [thread:$0]  %s15_s11, 256, %s17_s13, [#allocation3], %s195_s17, %s195_s17, %s196_s18  }
   0x6   :  { %s197_s19 = smov [#allocation5]  }
   0x7   :  { %s29_s20 = sshll.u32 %s197_s19, 4  ;;  %s30_s20 = int_to_ptr.vmem [resolvable:$true] %s29_s20 }
   0x8   :  { %35 = dma.hbm_to_vmem [thread:$0]  %s28_s16, 256, %s30_s20, [#allocation6], %s195_s17, %s195_s17, %s196_s18  }
   0x9   :  { %188 = dma.done.wait [#allocation3], 256  }
   0xa   :  { %189 = vsyncadd [#allocation3], 4294967040 }
   0xb   :  { %190 = dma.done.wait [#allocation6], 256  }
   0xc   :  { %191 = vsyncadd [#allocation6], 4294967040  ;;  %v51_v0 = vld [vmem:[#allocation2] sm:$0xff]  ;;  %v52_v1 = vld [vmem:[#allocation2 + $0x8] sm:$0xff]  ;;  %s198_s0 = smov [#allocation7]   ;;  %s96_s23 = sshll.u32 %s234_s2, 4  ;;  %s97_s23 = int_to_ptr.hbm [resolvable:$true] %s96_s23 }
   0xd   :  { %v53_v2 = vld [vmem:[#allocation5] sm:$0xff]  ;;  %v54_v3 = vld [vmem:[#allocation5 + $0x8] sm:$0xff]  ;;  %v57_v5 = vmul.f32 %v51_v0, %v51_v0  ;;  %v58_v6 = vmul.f32 %v52_v1, %v52_v1  ;;  %s94_s1 = sshll.u32 %s198_s0, 4  ;;  %s95_s1 = int_to_ptr.vmem [resolvable:$true] %s94_s1 }
   0xe   :  { %v55_v4 = vsub.f32 %v51_v0, %v53_v2  ;;  %v61_v7 = vmul.f32 %v53_v2, %v53_v2  ;;  %v56_v8 = vsub.f32 %v52_v1, %v54_v3  ;;  %v62_v9 = vmul.f32 %v54_v3, %v54_v3 }
   0xf   :  { %v59_v12 = vmul.f32 %v57_v5, %v51_v0  ;;  %v60_v13 = vmul.f32 %v58_v6, %v52_v1 }
  0x10   :  { %v67_v10 = vmul.f32 %v55_v4, %v55_v4  ;;  %v70_v11 = vand.u32 2147483647, %v55_v4  ;;  %v68_v14 = vmul.f32 %v56_v8, %v56_v8  ;;  %v71_v15 = vand.u32 2147483647, %v56_v8 }
  0x11   :  { %v63_v16 = vmul.f32 %v61_v7, %v53_v2  ;;  %v64_v17 = vmul.f32 %v62_v9, %v54_v3 }
  0x12   :  { %v69_v18 = vadd.f32 %v68_v14, %v67_v10  ;;  %v72_v19 = vadd.f32 %v71_v15, %v70_v11 }
  0x13   :  { %v65_v20 = vsub.f32 %v59_v12, %v63_v16  ;;  %v66_v21 = vsub.f32 %v60_v13, %v64_v17 }
  0x14   :  { %81 = vst [vmem:[#allocation7] sm:$0xff] %v69_v18 }
  0x15   :  { %v73_v22 = vmul.f32 %v65_v20, %v65_v20  ;;  %v74_v23 = vmul.f32 %v66_v21, %v66_v21  ;;  %85 = vst [vmem:[#allocation7 + $0x8] sm:$0xff] %v72_v19 }
  0x17   :  { %v75_v24 = vadd.f32 %v74_v23, %v73_v22 }
  0x19   :  { %89 = vst [vmem:[#allocation7 + $0x10] sm:$0xff] %v75_v24 }
  0x1a   :  { %102 = dma.vmem_to_hbm [thread:$0]  %s95_s1, 384, %s97_s23, [#allocation4], %s195_s17, %s195_s17, %s196_s18  }
  0x1b   :  { %192 = dma.done.wait [#allocation4], 384  }
  0x1c   :  { %193 = vsyncadd [#allocation4], 4294966912 }
  0x1d   :  { %107 = vsyncpa [#allocation3], 1 }
  0x1e   :  { %108 = vsyncpa [#allocation6], 1 }
  0x1f   :  { %109 = vsyncpa [#allocation4], 1 }

</bundles_post_ra>
